<compile_context>
chip_gen: v5e
topology: v5e:2x2
jax: 0.10.0
libtpu: 0.0.40
codegen_flags: <defaults>
</compile_context>

<pallas_src>
import functools

import jax
import jax.numpy as jnp
from jax.experimental import pallas as pl
from jax.experimental.pallas import tpu as pltpu


def _round_up(n, m):
    return ((n + m - 1) // m) * m


def _device_profile():
    """Returns (vmem_budget_bytes, bf16_vpu_ok, two_tensorcores) for the local chip."""
    kind = ""
    try:
        kind = jax.devices()[0].device_kind.lower()
    except Exception:
        pass
    if "v7" in kind or "7x" in kind:
        return 48 * 1024 * 1024, True, True      # 64 MiB physical VMEM, 2 TCs/chip
    if "v6" in kind:
        return 100 * 1024 * 1024, True, False    # 128 MiB physical VMEM
    if "v5" in kind or "v4" in kind or "v3" in kind or "v2" in kind:
        return 100 * 1024 * 1024, False, False   # no bf16 VPU/EUP (keep f32 epilogue)
    # Unknown device: conservative VMEM cap, f32 epilogue (always correct).
    return 48 * 1024 * 1024, False, False


def _derive_tiling(B, S, D, Cp, x_bytes, w_bytes, out_bytes, vmem_budget,
                   max_rows, two_cores):
    """Pick (bb, tm): batch elements and token rows per grid step."""
    # Bytes of VMEM per resident token-row (double-buffered blocks + intermediates).
    per_row = (2 * D * x_bytes        # x tile (double buffered)
               + 2 * Cp * out_bytes   # output tile (double buffered)
               + 4 * D * 4            # f32 intermediates (x, centered, xn, h)
               + D * w_bytes          # matmul LHS operand in compute dtype
               + Cp * 4)              # f32 matmul accumulator
    fixed = (2 * D * Cp * w_bytes     # projection weight (double buffered)
             + 2 * Cp * 4             # bias
             + 2 * 2 * D * 4)         # packed (1+scale, shift)
    avail = max(int(vmem_budget * 0.9) - fixed, 64 * 1024)
    r_max = max(8, min(max_rows, (avail // per_row) // 8 * 8))

    if S > r_max:
        return 1, r_max               # tile over S; ragged last block is masked by Pallas

    bb, tm = 1, S                      # whole sequence fits in one tile (tm == full dim)
    if B > 1 and S % 8 == 0 and S < r_max:
        # Short-sequence regime: fold several batch elements into one grid step,
        # but keep >= 2 grid steps so both v7x TensorCores get work.
        bb_want = min(B, max(1, r_max // S), max(1, B // 2))
        bb = max(d for d in range(1, bb_want + 1) if B % d == 0)   # bb divides B
    elif two_cores and B == 1 and S >= 16:
        # Single batch element, single tile: split the sequence across both TCs.
        tm = _round_up((S + 1) // 2, 8)
    return bb, tm


def _final_layer_kernel(x_ref, mod_ref, w_ref, b_ref, o_ref, *, epi_dtype):
    # x_ref:   (bb, tm, D)   token rows for bb batch elements
    # mod_ref: (bb, 2, D)    per-batch [1 + scale, shift], f32
    # w_ref:   (D, Cp)       projection weight (lane-padded, compute dtype)
    # b_ref:   (1, Cp)       projection bias (lane-padded, f32)
    # o_ref:   (bb, tm, Cp)  output tile
    bb, tm, d = x_ref.shape
    cp = o_ref.shape[-1]

    x = x_ref[...].astype(jnp.float32)
    # LayerNorm over the feature dim, no affine, eps = 1e-5 (torch default).
    mean = jnp.mean(x, axis=-1, keepdims=True)
    cen = x - mean
    var = jnp.mean(cen * cen, axis=-1, keepdims=True)
    xn = cen * jax.lax.rsqrt(var + 1e-5)

    mod = mod_ref[...].astype(epi_dtype)           # (bb, 2, D)
    scale1 = mod[:, 0:1, :]                        # 1 + scale (folded on host)
    shift = mod[:, 1:2, :]
    h = xn.astype(epi_dtype) * scale1 + shift      # AdaLN modulation (broadcast over tm)
    h = h * jax.nn.sigmoid(h)                      # SiLU on the x path (EUP)

    w = w_ref[...]
    b = b_ref[...].astype(jnp.float32)
    if bb == 1:
        y = jnp.dot(h[0].astype(w.dtype), w, preferred_element_type=jnp.float32)
        o_ref[0] = (y + b).astype(o_ref.dtype)
    else:
        # Wrapper guarantees tm % 8 == 0 and epi_dtype == f32 here, so merging the
        # leading dims is layout-free.
        h2 = h.reshape(bb * tm, d).astype(w.dtype)
        y = jnp.dot(h2, w, preferred_element_type=jnp.float32) + b
        o_ref[...] = y.reshape(bb, tm, cp).astype(o_ref.dtype)


@functools.partial(jax.jit,
                   static_argnames=("compute_dtype", "out_dtype", "max_rows"))
def final_layer_forward(x, cond, params, *, compute_dtype=jnp.bfloat16,
                        out_dtype=None, max_rows=1024):
    """x: [B, S, D], cond: [B, D] -> [B, S, Cout] (dtype = out_dtype, default compute_dtype)."""
    B, S, D = x.shape
    Cout = params["w_proj"].shape[1]
    out_dtype = jnp.dtype(compute_dtype if out_dtype is None else out_dtype)

    vmem_budget, bf16_math_ok, two_cores = _device_profile()

    # --- glue: AdaLN modulation branch (tiny [B,D]@[D,2D] matmul, stays in JAX) ---
    c = cond.astype(jnp.float32)
    c = c * jax.nn.sigmoid(c)                                   # SiLU(cond)
    mod = c @ params["w_mod"].astype(jnp.float32) + params["b_mod"].astype(jnp.float32)
    shift, scale = jnp.split(mod, 2, axis=-1)                   # [B, D] each
    # Pack per-batch (1 + scale, shift) into ONE small input: one DMA per grid step.
    mod_packed = jnp.stack([scale + 1.0, shift], axis=1)        # [B, 2, D] f32

    # --- feed x in the compute dtype (halves the dominant HBM stream when bf16);
    #     ideally the producer already emits it in this dtype. ---
    if x.dtype != jnp.dtype(compute_dtype):
        x = x.astype(compute_dtype)

    # --- lane-dense projection: pad Cout to a multiple of 128 lanes (unmasked vst). ---
    Cp = _round_up(Cout, 128)
    w = params["w_proj"].astype(compute_dtype)
    b = params["b_proj"].reshape(1, -1).astype(jnp.float32)
    if Cp != Cout:
        w = jnp.pad(w, ((0, 0), (0, Cp - Cout)))
        b = jnp.pad(b, ((0, 0), (0, Cp - Cout)))

    x_bytes = x.dtype.itemsize
    w_bytes = jnp.dtype(compute_dtype).itemsize
    out_bytes = out_dtype.itemsize

    bb, tm = _derive_tiling(B, S, D, Cp, x_bytes, w_bytes, out_bytes,
                            vmem_budget, max_rows, two_cores)
    # Epilogue (modulation + SiLU) dtype: bf16 on chips with a bf16 VPU/EUP, else f32.
    epi_dtype = jnp.float32
    if bb == 1 and bf16_math_ok and jnp.dtype(compute_dtype).itemsize == 2:
        epi_dtype = jnp.dtype(compute_dtype)

    # No host-side padding of x: ragged last sequence block is masked by Pallas.
    grid = (B // bb, pl.cdiv(S, tm))

    cost = pl.CostEstimate(
        flops=2 * B * S * D * Cp,
        transcendentals=B * S * D,
        bytes_accessed=(B * S * D * x_bytes          # x in
                        + B * S * Cp * out_bytes     # out
                        + D * Cp * w_bytes + Cp * 4  # weights / bias
                        + B * 2 * D * 4))            # packed modulation

    out = pl.pallas_call(
        functools.partial(_final_layer_kernel, epi_dtype=epi_dtype),
        out_shape=jax.ShapeDtypeStruct((B, S, Cp), out_dtype),
        grid_spec=pltpu.PrefetchScalarGridSpec(
            num_scalar_prefetch=0,
            grid=grid,
            in_specs=[
                pl.BlockSpec((bb, tm, D), lambda bi, si: (bi, si, 0)),   # x
                pl.BlockSpec((bb, 2, D), lambda bi, si: (bi, 0, 0)),     # (1+scale, shift)
                pl.BlockSpec((D, Cp), lambda bi, si: (0, 0)),            # w_proj
                pl.BlockSpec((1, Cp), lambda bi, si: (0, 0)),            # b_proj
            ],
            out_specs=pl.BlockSpec((bb, tm, Cp), lambda bi, si: (bi, si, 0)),
        ),
        compiler_params=pltpu.CompilerParams(
            dimension_semantics=("parallel", "parallel"),
            vmem_limit_bytes=int(vmem_budget)),
        cost_estimate=cost,
    )(x, mod_packed, w, b)

    # TODO(synk): expose the lane-padded [B, S, Cp] slab so a fused consumer can
    # skip this (cheap) Cp -> Cout slice pass entirely.
    return out if Cp == Cout else out[:, :, :Cout]


def init_params(key, d_model, channels=3, patch_size=1):
    k1, k2, k3, _ = jax.random.split(key, 4)
    out_dim = channels * patch_size * patch_size
    s = 1.0 / jnp.sqrt(d_model)
    return {
        # AdaLN modulation linear: d_model -> 2*d_model
        "w_mod": jax.random.normal(k1, (d_model, 2 * d_model), jnp.float32) * s,
        "b_mod": jnp.zeros((2 * d_model,), jnp.float32),
        # Final projection: d_model -> channels*patch_size^2
        "w_proj": jax.random.normal(k2, (d_model, out_dim), jnp.float32) * s,
        "b_proj": jax.random.normal(k3, (1, out_dim), jnp.float32) * 0.01,
    }


def _reference(x, cond, params):
    """Pure-JAX f32 reference."""
    c = cond.astype(jnp.float32)
    c = c * jax.nn.sigmoid(c)
    mod = c @ params["w_mod"] + params["b_mod"]
    shift, scale = jnp.split(mod, 2, axis=-1)
    xf = x.astype(jnp.float32)
    mean = jnp.mean(xf, axis=-1, keepdims=True)
    var = jnp.mean((xf - mean) ** 2, axis=-1, keepdims=True)
    xn = (xf - mean) * jax.lax.rsqrt(var + 1e-5)
    h = xn * (1.0 + scale[:, None, :]) + shift[:, None, :]
    h = h * jax.nn.sigmoid(h)
    return h @ params["w_proj"] + params["b_proj"][0]


if __name__ == "__main__":
    key = jax.random.PRNGKey(0)

    # Case 1: sample_size=4 -> S=16 tokens, d_model=32, channels=3 (module defaults).
    kx, kc, kp = jax.random.split(jax.random.fold_in(key, 1), 3)
    B, S, D = 2, 16, 32
    x = jax.random.normal(kx, (B, S, D), jnp.float32)
    cond = jax.random.normal(kc, (B, D), jnp.float32)
    params = init_params(kp, D, channels=3, patch_size=1)
    ref = _reference(x, cond, params)

    out_f32 = jax.block_until_ready(
        final_layer_forward(x, cond, params, compute_dtype=jnp.float32))
    assert out_f32.shape == (B, S, 3), out_f32.shape
    assert jnp.allclose(out_f32, ref, atol=5e-3, rtol=5e-3), float(
        jnp.max(jnp.abs(out_f32 - ref)))

    out_bf16 = jax.block_until_ready(final_layer_forward(x, cond, params))
    assert out_bf16.shape == (B, S, 3), out_bf16.shape
    err = jnp.abs(out_bf16.astype(jnp.float32) - ref)
    assert jnp.allclose(out_bf16.astype(jnp.float32), ref, atol=8e-2, rtol=8e-2), float(
        jnp.max(err))

    # Case 2: short sequence, several batch elements -> exercises batch folding (bb > 1).
    kx, kc, kp = jax.random.split(jax.random.fold_in(key, 2), 3)
    B, S, D = 4, 48, 128
    x = jax.random.normal(kx, (B, S, D), jnp.float32)
    cond = jax.random.normal(kc, (B, D), jnp.float32)
    params = init_params(kp, D, channels=3, patch_size=2)   # Cout = 12
    ref = _reference(x, cond, params)
    out = jax.block_until_ready(
        final_layer_forward(x, cond, params, compute_dtype=jnp.float32))
    assert out.shape == (B, S, 12), out.shape
    assert jnp.allclose(out, ref, atol=5e-3, rtol=5e-3), float(jnp.max(jnp.abs(out - ref)))

    # Case 3: sequence longer than the row tile -> exercises the ragged last block
    # (no host-side padding, masked writeback).
    kx, kc, kp = jax.random.split(jax.random.fold_in(key, 3), 3)
    B, S, D = 1, 300, 128
    x = jax.random.normal(kx, (B, S, D), jnp.float32)
    cond = jax.random.normal(kc, (B, D), jnp.float32)
    params = init_params(kp, D, channels=3, patch_size=1)
    ref = _reference(x, cond, params)
    out = jax.block_until_ready(
        final_layer_forward(x, cond, params, compute_dtype=jnp.float32, max_rows=128))
    assert out.shape == (B, S, 3), out.shape
    assert jnp.allclose(out, ref, atol=5e-3, rtol=5e-3), float(jnp.max(jnp.abs(out - ref)))

    print("KERNEL_OK")
</pallas_src>

<mosaic_0001>
module attributes {stable_mosaic.version = 11 : i64} {
  func.func @_final_layer_kernel(%arg0: i32, %arg1: i32, %arg2: memref<1x16x32xf32, #tpu.memory_space<vmem>>, %arg3: memref<1x2x32xf32, #tpu.memory_space<vmem>>, %arg4: memref<32x128xf32, #tpu.memory_space<vmem>>, %arg5: memref<1x128xf32, #tpu.memory_space<vmem>>, %arg6: memref<1x16x128xf32, #tpu.memory_space<vmem>>) attributes {dimension_semantics = [#tpu.dimension_semantics<parallel>, #tpu.dimension_semantics<parallel>], iteration_bounds = array<i64: 2, 1>, scalar_prefetch = 0 : i64, scratch_operands = 0 : i64, tpu.core_type = #tpu.core_type<tc>, window_params = [{transform_indices = @transform_0, window_bounds = array<i64: 1, 16, 32>}, {transform_indices = @transform_1, window_bounds = array<i64: 1, 2, 32>}, {pipeline_mode = #tpu.pipeline_mode<synchronous>, transform_indices = @transform_2, window_bounds = array<i64: 32, 128>}, {pipeline_mode = #tpu.pipeline_mode<synchronous>, transform_indices = @transform_3, window_bounds = array<i64: 1, 128>}, {transform_indices = @transform_4, window_bounds = array<i64: 1, 16, 128>}]} {
    %c0 = arith.constant 0 : index
    %c0_0 = arith.constant 0 : index
    %c0_1 = arith.constant 0 : index
    %0 = vector.load %arg2[%c0, %c0_0, %c0_1] : memref<1x16x32xf32, #tpu.memory_space<vmem>>, vector<1x16x32xf32>
    %cst = arith.constant dense<0.000000e+00> : vector<1x16xf32>
    %1 = vector.multi_reduction <add>, %0, %cst [2] : vector<1x16x32xf32> to vector<1x16xf32>
    %2 = vector.shape_cast %1 : vector<1x16xf32> to vector<1x16x1xf32>
    %cst_2 = arith.constant 3.200000e+01 : f32
    %3 = vector.broadcast %cst_2 : f32 to vector<1x16x1xf32>
    %4 = arith.divf %2, %3 : vector<1x16x1xf32>
    %5 = vector.broadcast %4 : vector<1x16x1xf32> to vector<1x16x32xf32>
    %6 = arith.subf %0, %5 : vector<1x16x32xf32>
    %7 = arith.mulf %6, %6 : vector<1x16x32xf32>
    %cst_3 = arith.constant dense<0.000000e+00> : vector<1x16xf32>
    %8 = vector.multi_reduction <add>, %7, %cst_3 [2] : vector<1x16x32xf32> to vector<1x16xf32>
    %9 = vector.shape_cast %8 : vector<1x16xf32> to vector<1x16x1xf32>
    %cst_4 = arith.constant 3.200000e+01 : f32
    %10 = vector.broadcast %cst_4 : f32 to vector<1x16x1xf32>
    %11 = arith.divf %9, %10 : vector<1x16x1xf32>
    %cst_5 = arith.constant 9.99999974E-6 : f32
    %12 = vector.broadcast %cst_5 : f32 to vector<1x16x1xf32>
    %13 = arith.addf %11, %12 : vector<1x16x1xf32>
    %14 = math.rsqrt %13 : vector<1x16x1xf32>
    %15 = vector.broadcast %14 : vector<1x16x1xf32> to vector<1x16x32xf32>
    %16 = arith.mulf %6, %15 : vector<1x16x32xf32>
    %c0_6 = arith.constant 0 : index
    %c0_7 = arith.constant 0 : index
    %c0_8 = arith.constant 0 : index
    %17 = vector.load %arg3[%c0_6, %c0_7, %c0_8] : memref<1x2x32xf32, #tpu.memory_space<vmem>>, vector<1x2x32xf32>
    %18 = vector.extract_strided_slice %17 {offsets = [0, 0, 0], sizes = [1, 1, 32], strides = [1, 1, 1]} : vector<1x2x32xf32> to vector<1x1x32xf32>
    %19 = vector.extract_strided_slice %17 {offsets = [0, 1, 0], sizes = [1, 1, 32], strides = [1, 1, 1]} : vector<1x2x32xf32> to vector<1x1x32xf32>
    %20 = vector.broadcast %18 : vector<1x1x32xf32> to vector<1x16x32xf32>
    %21 = arith.mulf %16, %20 : vector<1x16x32xf32>
    %22 = vector.broadcast %19 : vector<1x1x32xf32> to vector<1x16x32xf32>
    %23 = arith.addf %21, %22 : vector<1x16x32xf32>
    %24 = arith.negf %23 : vector<1x16x32xf32>
    %25 = math.exp %24 : vector<1x16x32xf32>
    %cst_9 = arith.constant 1.000000e+00 : f32
    %26 = vector.broadcast %cst_9 : f32 to vector<1x16x32xf32>
    %27 = arith.addf %26, %25 : vector<1x16x32xf32>
    %28 = arith.divf %26, %27 : vector<1x16x32xf32>
    %29 = arith.mulf %23, %28 : vector<1x16x32xf32>
    %c0_10 = arith.constant 0 : index
    %c0_11 = arith.constant 0 : index
    %30 = vector.load %arg4[%c0_10, %c0_11] : memref<32x128xf32, #tpu.memory_space<vmem>>, vector<32x128xf32>
    %c0_12 = arith.constant 0 : index
    %c0_13 = arith.constant 0 : index
    %31 = vector.load %arg5[%c0_12, %c0_13] : memref<1x128xf32, #tpu.memory_space<vmem>>, vector<1x128xf32>
    %32 = vector.shape_cast %29 : vector<1x16x32xf32> to vector<16x32xf32>
    %cst_14 = arith.constant dense<0.000000e+00> : vector<16x128xf32>
    %33 = tpu.matmul %32, %30, %cst_14 {dimension_numbers = #tpu.dot_dimension_numbers<[1], [0], [0], [1], [0, 0, 1, 1], [], []>} : vector<16x32xf32>, vector<32x128xf32>, vector<16x128xf32> -> vector<16x128xf32>
    %34 = vector.broadcast %31 : vector<1x128xf32> to vector<16x128xf32>
    %35 = arith.addf %33, %34 : vector<16x128xf32>
    %c0_15 = arith.constant 0 : index
    %c0_16 = arith.constant 0 : index
    %c0_17 = arith.constant 0 : index
    %36 = vector.load %arg6[%c0_15, %c0_16, %c0_17] : memref<1x16x128xf32, #tpu.memory_space<vmem>>, vector<1x16x128xf32>
    %37 = vector.shape_cast %36 : vector<1x16x128xf32> to vector<16x128xf32>
    %38 = vector.shape_cast %35 : vector<16x128xf32> to vector<1x16x128xf32>
    tpu.vector_store %arg6[%c0_15, %c0_16, %c0_17], %38 {strides = array<i32>} : memref<1x16x128xf32, #tpu.memory_space<vmem>>, vector<1x16x128xf32>,
    return
  }
  func.func @transform_0(%arg0: i32, %arg1: i32) -> (i32, i32, i32) {
    %c0_i32 = arith.constant 0 : i32
    %c0_i32_0 = arith.constant 0 : i32
    return %arg0, %arg1, %c0_i32 : i32, i32, i32
  }
  func.func @transform_1(%arg0: i32, %arg1: i32) -> (i32, i32, i32) {
    %c0_i32 = arith.constant 0 : i32
    %c0_i32_0 = arith.constant 0 : i32
    %c0_i32_1 = arith.constant 0 : i32
    return %arg0, %c0_i32, %c0_i32_0 : i32, i32, i32
  }
  func.func @transform_2(%arg0: i32, %arg1: i32) -> (i32, i32) {
    %c0_i32 = arith.constant 0 : i32
    %c0_i32_0 = arith.constant 0 : i32
    %c0_i32_1 = arith.constant 0 : i32
    return %c0_i32, %c0_i32_0 : i32, i32
  }
  func.func @transform_3(%arg0: i32, %arg1: i32) -> (i32, i32) {
    %c0_i32 = arith.constant 0 : i32
    %c0_i32_0 = arith.constant 0 : i32
    %c0_i32_1 = arith.constant 0 : i32
    return %c0_i32, %c0_i32_0 : i32, i32
  }
  func.func @transform_4(%arg0: i32, %arg1: i32) -> (i32, i32, i32) {
    %c0_i32 = arith.constant 0 : i32
    %c0_i32_0 = arith.constant 0 : i32
    return %arg0, %arg1, %c0_i32 : i32, i32, i32
  }
}

</mosaic_0001>

<bundles_post_ra>
// kernel: final_layer_forward.1
= control target key start
LH: loop header
LB: loop body
LE: loop exit
PB: predicated region body
PF: predicated region fallthrough
CT: control target
= control target key end

     0   :  { %s605_s15 = smov 0   ;;  %s607_s16 = smov 0   ;;  %s670_s0 = inlined_call_operand.vmem [shape: f32[2,16,32], index: 0, kind: input, shape index: {}]   ;;  %s671_s1 = inlined_call_operand.vmem [shape: f32[2,2,32], index: 1, kind: input, shape index: {}]   ;;  %s672_s2 = inlined_call_operand.vmem [shape: f32[32,128], index: 2, kind: input, shape index: {}]   ;;  %s673_s3 = inlined_call_operand.vmem [shape: f32[1,128], index: 3, kind: input, shape index: {}]   ;;  %s674_s4 = inlined_call_operand.vmem [shape: f32[2,16,128], index: 4, kind: output, shape index: {}]  }
   0x1   :  { %s609_s17 = smov 0  }
   0x2 LB: > { %s26_s18 = sadd.s32 1, %s573_s16  ;;  %p497_p0 = scmp.ge.s32.totalorder %s577_s17, 1  ;;  %s577_s17 = sphi %s609_s17, %s14_s17   ;;  %s573_s16 = sphi %s607_s16, %s676_s16   ;;  %s569_s15 = sphi %s605_s15, %s675_s15  }
   0x3   : > { %p28_p1 = scmp.ge.s32.totalorder %s26_s18, 2  ;;  %p192_p2 = scmp.lt.s32.totalorder %s577_s17, 3 }
   0x5   : > { %s678_s18 = smov (%p28_p1, %s26_s18), 0  ;;  %p193_p3 = pnand %p497_p0, %p192_p2 }
   0x6   : > { %p231_p4 = scmp.lt.s32.totalorder (!%p193_p3), %s569_s15, 1 }
   0x7   : > { %196 = sbr.rel (%p193_p3) target bundleno = 451 (0x1c3), region = 36 }
   0xc   : > { %s680_s15 = smov (!%p231_p4, %s569_s15), 1  ;;  %vm256_vm0 = vcmask 261120   ;;  %v579_v4 = vmov 32.0   ;;  %v358_v21 = vld [vmem:[%s672_s2 + $0x18] sm:$0xff]  ;;  %v357_v22 = vld [vmem:[%s672_s2 + $0x10] sm:$0xff]  ;;  %v356_v25 = vld [vmem:[%s672_s2 + $0x8] sm:$0xff] }
   0xd   : > { %s509_s19 = sshll.u32 %s680_s15, 4  ;;  %541 = vrcp.f32 %v579_v4  ;;  %381 = vmatpush.msra.mxu0 %v358_v21  ;;  %511 = vmatpush.msra.mxu1 %v358_v21  ;;  %v355_v27 = vld [vmem:[%s672_s2] sm:$0xff]  ;;  %s500_s5 = sshll.u32 %s680_s15, 1 }
   0xe   : > { %s238_s22 = scalar_lea.vmem %s670_s0, %s509_s19  ;;  %s243_s8 = scalar_lea.vmem %s671_s1, %s500_s5 }
   0xf   : > { %v254_v0 = vld [vmem:[%s238_s22] sm:$0xff]  ;;  %v255_v2 = vld [vmem:[%s238_s22 + $0x8] sm:$0xff]  ;;  %382 = vmatpush.msra.mxu0 %v357_v22  ;;  %512 = vmatpush.msra.mxu1 %v357_v22  ;;  %s252_s13 = scalar_lea.vmem %s674_s4, %s509_s19 }
  0x10   : > { %v257_v1 = vsel %vm256_vm0, %v254_v0, 0.0  ;;  %v260_v3 = vsel %vm256_vm0, %v255_v2, 0.0  ;;  %v308_v35 = vld [vmem:[%s243_s8] sm:$0x3] }
  0x11   : > { %258 = vadd.xlane.f32.xlu0 %v257_v1  ;;  %383 = vmatpush.msra.mxu0 %v356_v25  ;;  %v309_v40 = vperm.slane %v308_v35, 0  ;;  %v312_v44 = vperm.slane %v308_v35, 1 }
  0x12   : > { %513 = vmatpush.msra.mxu1 %v356_v25 }
  0x13   : > { %v542_v5 = vpop.eup %541  ;;  %384 = vmatpush.msra.mxu0 %v355_v27 }
  0x14   : > { %v264_v6 = vmul.f32 32.0, %v542_v5  ;;  %vm268_vm1 = vweird.f32 %v542_v5  ;;  %514 = vmatpush.msra.mxu1 %v355_v27 }
  0x16   : > { %v265_v7 = vsub.f32 1.0, %v264_v6 }
  0x18   : > { %v266_v8 = vmul.f32 %v542_v5, %v265_v7 }
  0x19   : > { %261 = vadd.xlane.f32.xlu0 %v260_v3 }
  0x1a   : > { %v267_v9 = vadd.f32 %v542_v5, %v266_v8 }
  0x1c   : > { %v269_v10 = vsel %vm268_vm1, %v542_v5, %v267_v9 }
  0x84   : > { %v259_v11 = vpop.xlane.xlu0 %258 }
  0x85   : > { %v270_v12 = vmul.f32 %v269_v10, %v259_v11 }
  0x87   : > { %v272_v13 = vsub.f32 %v254_v0, %v270_v12 }
  0x89   : > { %v274_v14 = vmul.f32 %v272_v13, %v272_v13 }
  0x8b   : > { %v276_v15 = vsel %vm256_vm0, %v274_v14, 0.0 }
  0x8c   : > { %277 = vadd.xlane.f32.xlu1 %v276_v15  ;;  %v262_v16 = vpop.xlane.xlu0 %261 }
  0x8d   : > { %v271_v17 = vmul.f32 %v269_v10, %v262_v16 }
  0x8f   : > { %v273_v18 = vsub.f32 %v255_v2, %v271_v17 }
  0x91   : > { %v275_v19 = vmul.f32 %v273_v18, %v273_v18 }
  0x93   : > { %v279_v20 = vsel %vm256_vm0, %v275_v19, 0.0 }
  0x94   : > { %280 = vadd.xlane.f32.xlu1 %v279_v20 }
  0xff   : > { %v278_v23 = vpop.xlane.xlu1 %277 }
 0x100   : > { %v282_v24 = vmul.f32 %v278_v23, %v269_v10 }
 0x102   : > { %v284_v26 = vadd.f32 1e-05, %v282_v24 }
 0x104   : > { %543 = vrsqrt.f32 %v284_v26  ;;  %vm292_vm3 = vweird.f32 %v284_v26 }
 0x107   : > { %v281_v28 = vpop.xlane.xlu1 %280 }
 0x108   : > { %v283_v29 = vmul.f32 %v281_v28, %v269_v10 }
 0x10a   : > { %v544_v30 = vpop.eup %543  ;;  %v285_v31 = vadd.f32 1e-05, %v283_v29 }
 0x10b   : > { %v287_v32 = vmul.f32 %v544_v30, %v284_v26  ;;  %vm293_vm2 = vweird.f32 %v544_v30 }
 0x10c   : > { %545 = vrsqrt.f32 %v285_v31  ;;  %vm294_vm4 = vmor %vm292_vm3, %vm293_vm2  ;;  %vm302_vm6 = vweird.f32 %v285_v31 }
 0x10d   : > { %v288_v33 = vmul.f32 %v544_v30, %v287_v32 }
 0x10f   : > { %v289_v34 = vmul.f32 0.5, %v288_v33 }
 0x111   : > { %v290_v36 = vsub.f32 1.5, %v289_v34 }
 0x112   : > { %v546_v37 = vpop.eup %545 }
 0x113   : > { %v291_v38 = vmul.f32 %v544_v30, %v290_v36  ;;  %v297_v39 = vmul.f32 %v546_v37, %v285_v31  ;;  %vm303_vm5 = vweird.f32 %v546_v37 }
 0x114   : > { %vm304_vm7 = vmor %vm302_vm6, %vm303_vm5 }
 0x115   : > { %v295_v41 = vsel %vm294_vm4, %v544_v30, %v291_v38  ;;  %v298_v42 = vmul.f32 %v546_v37, %v297_v39 }
 0x116   : > { %v306_v43 = vmul.f32 %v295_v41, %v272_v13 }
 0x117   : > { %v299_v45 = vmul.f32 0.5, %v298_v42 }
 0x118   : > { %v310_v46 = vmul.f32 %v309_v40, %v306_v43 }
 0x119   : > { %v300_v47 = vsub.f32 1.5, %v299_v45 }
 0x11a   : > { %v313_v48 = vadd.f32 %v312_v44, %v310_v46 }
 0x11b   : > { %v301_v49 = vmul.f32 %v546_v37, %v300_v47 }
 0x11c   : > { %v503_v50 = vmul.f32 -1.442695, %v313_v48 }
 0x11d   : > { %v305_v51 = vsel %vm304_vm7, %v546_v37, %v301_v49 }
 0x11e   : > { %v307_v52 = vmul.f32 %v305_v51, %v273_v18  ;;  %547 = vpow2.f32 %v503_v50  ;;  %v540_v18 = vld [vmem:[%s673_s3] ss:$0 sm:$0xff] }
 0x120   : > { %v311_v53 = vmul.f32 %v309_v40, %v307_v52 }
 0x122   : > { %v314_v54 = vadd.f32 %v312_v44, %v311_v53 }
 0x124   : > { %v548_v55 = vpop.eup %547  ;;  %v504_v56 = vmul.f32 -1.442695, %v314_v54 }
 0x125   : > { %v321_v57 = vadd.f32 1.0, %v548_v55 }
 0x126   : > { %549 = vpow2.f32 %v504_v56 }
 0x127   : > { %551 = vrcp.f32 %v321_v57  ;;  %v334_v63 = vand.u32 2147483648, %v321_v57  ;;  %v332_v1 = vand.u32 2147483647, %v321_v57  ;;  %vm328_vm9 = vweird.f32 %v321_v57 }
 0x129   : > { %v335_v4 = vor.u32 1.1754944e-38, %v334_v63  ;;  %vm333_vm11 = vcmp.eq.f32.partialorder %v332_v1, 8.507059e+37 }
 0x12c   : > { %v550_v58 = vpop.eup %549 }
 0x12d   : > { %v552_v59 = vpop.eup %551  ;;  %v322_v60 = vadd.f32 1.0, %v550_v58 }
 0x12e   : > { %v324_v61 = vmul.f32 %v552_v59, %v321_v57  ;;  %vm329_vm8 = vweird.f32 %v552_v59 }
 0x12f   : > { %553 = vrcp.f32 %v322_v60  ;;  %vm330_vm10 = vmor %vm328_vm9, %vm329_vm8  ;;  %v349_v10 = vand.u32 2147483648, %v322_v60  ;;  %v347_v12 = vand.u32 2147483647, %v322_v60  ;;  %vm343_vm13 = vweird.f32 %v322_v60 }
 0x130   : > { %v325_v62 = vsub.f32 1.0, %v324_v61 }
 0x131   : > { %v350_v14 = vor.u32 1.1754944e-38, %v349_v10  ;;  %vm348_vm15 = vcmp.eq.f32.partialorder %v347_v12, 8.507059e+37 }
 0x132   : > { %v326_v0 = vmul.f32 %v552_v59, %v325_v62 }
 0x134   : > { %v327_v2 = vadd.f32 %v552_v59, %v326_v0 }
 0x135   : > { %v554_v3 = vpop.eup %553 }
 0x136   : > { %v331_v5 = vsel %vm330_vm10, %v552_v59, %v327_v2  ;;  %v339_v6 = vmul.f32 %v554_v3, %v322_v60  ;;  %vm344_vm12 = vweird.f32 %v554_v3 }
 0x137   : > { %v336_v7 = vsel %vm333_vm11, %v335_v4, %v331_v5  ;;  %vm345_vm14 = vmor %vm343_vm13, %vm344_vm12 }
 0x138   : > { %v353_v8 = vmul.f32 %v336_v7, %v313_v48  ;;  %v340_v9 = vsub.f32 1.0, %v339_v6 }
 0x13a   : > { %505 = vmatmul.msk.f32.vlgmr.msra.gmra.mxu0 %vm256_vm0, %v353_v8  ;;  %v341_v11 = vmul.f32 %v554_v3, %v340_v9 }
 0x13c   : > { %v342_v13 = vadd.f32 %v554_v3, %v341_v11 }
 0x13e   : > { %v346_v15 = vsel %vm345_vm14, %v554_v3, %v342_v13 }
 0x13f   : > { %v351_v16 = vsel %vm348_vm15, %v350_v14, %v346_v15 }
 0x140   : > { %v354_v17 = vmul.f32 %v351_v16, %v314_v54 }
 0x142   : > { %506 = vmatmul.msk.f32.vlgmr.msra.gmra.mxu1 %vm256_vm0, %v354_v17 }
 0x1b7   : > { %v386_v19 = vpop.f32.mrf.mxu0 }
 0x1b8   : > { %v387_v20 = vadd.f32 %v540_v18, %v386_v19 }
 0x1ba   : > { %392 = vst [vmem:[%s252_s13] sm:$0xff] %v387_v20 }
 0x1bf   : > { %v389_v21 = vpop.f32.mrf.mxu1 }
 0x1c0   : > { %v390_v22 = vadd.f32 %v540_v18, %v389_v21 }
 0x1c2   : > { %393 = vst [vmem:[%s252_s13 + $0x8] sm:$0xff] %v390_v22 }
 0x1c3 PF: > { %s14_s17 = sadd.s32 1, %s577_s17   ;;  %s675_s15 = smov %s573_s16 }
 0x1c4   : > { %p11_p5 = scmp.ge.s32.totalorder %s14_s17, 4   ;;  %s676_s16 = smov %s678_s18 }
 0x1c6   :  { %13 = sbr.rel (!%p11_p5) target bundleno = 2 (0x2), region = 69 }

</bundles_post_ra>
